<compile_context>
chip_gen: v6e
topology: v6e:2x2x1
jax: 0.10.0
libtpu: 0.0.40
codegen_flags: <defaults>
</compile_context>

<pallas_src>
import functools

import jax
import jax.numpy as jnp
from jax.experimental import pallas as pl
from jax.experimental.pallas import tpu as pltpu


def _pick_tile(size, preferred, mult):
    """Block size: full extent if small/indivisible, else a divisor that is a multiple of `mult`."""
    if size <= preferred:
        return size
    if size % preferred == 0:
        return preferred
    for cand in range(preferred, mult - 1, -mult):
        if size % cand == 0:
            return cand
    # TODO(synk): for very large indivisible dims, pad + mask instead of one giant block.
    return size


def _pick_head_group(num_heads, head_dim):
    """Heads per attention block: smallest divisor of H whose lane width (g*Dh)
    is a multiple of 128 (lane-dense blocks / stores); fall back to all heads
    (block = full D, always a legal BlockSpec)."""
    for g in range(1, num_heads + 1):
        if num_heads % g == 0 and (g * head_dim) % 128 == 0:
            return g
    return num_heads


# ----------------------------- Linear: y = x @ w (+ b) -----------------------------

def _matmul_kernel(x_ref, w_ref, o_ref, acc_ref):
    @pl.when(pl.program_id(2) == 0)
    def _():
        acc_ref[...] = jnp.zeros_like(acc_ref)

    acc_ref[...] += jnp.dot(x_ref[...], w_ref[...],
                            preferred_element_type=jnp.float32)

    @pl.when(pl.program_id(2) == pl.num_programs(2) - 1)
    def _():
        o_ref[...] = acc_ref[...].astype(o_ref.dtype)


def _matmul_bias_kernel(x_ref, w_ref, b_ref, o_ref, acc_ref):
    @pl.when(pl.program_id(2) == 0)
    def _():
        acc_ref[...] = jnp.zeros_like(acc_ref)

    acc_ref[...] += jnp.dot(x_ref[...], w_ref[...],
                            preferred_element_type=jnp.float32)

    @pl.when(pl.program_id(2) == pl.num_programs(2) - 1)
    def _():
        o_ref[...] = (acc_ref[...] + b_ref[...].astype(jnp.float32)).astype(o_ref.dtype)


def pallas_linear(x, w, b=None):
    """x: (M, K), w: (K, N), optional b: (N,) -> (M, N), operands in their own dtype, f32 accumulate."""
    M, K = x.shape
    K2, N = w.shape
    assert K == K2
    # Keep >=2 M-blocks when M is large enough so both v7x TensorCores get work.
    tm = _pick_tile(M, 256 if M >= 512 else 128, 8)
    tn = _pick_tile(N, 256, 128)   # lane-dense output tiles
    tk = _pick_tile(K, 512, 128)
    grid = (M // tm, N // tn, K // tk)

    x_spec = pl.BlockSpec((tm, tk), lambda i, j, k: (i, k))
    # TODO(synk): if the K-loop DMA is exposed in profiles, try pipeline_mode=pl.Buffered(3) here.
    w_spec = pl.BlockSpec((tk, tn), lambda i, j, k: (k, j))
    o_spec = pl.BlockSpec((tm, tn), lambda i, j, k: (i, j))
    scratch = [pltpu.VMEM((tm, tn), jnp.float32)]
    cparams = pltpu.CompilerParams(
        dimension_semantics=("parallel", "parallel", "arbitrary"))

    if b is None:
        # Bias-free path (qkv_bias=False): skip the bias DMA and epilogue add.
        return pl.pallas_call(
            _matmul_kernel,
            out_shape=jax.ShapeDtypeStruct((M, N), x.dtype),
            grid_spec=pltpu.PrefetchScalarGridSpec(
                num_scalar_prefetch=0, grid=grid,
                in_specs=[x_spec, w_spec], out_specs=o_spec,
                scratch_shapes=scratch),
            compiler_params=cparams,
        )(x, w)

    b2 = b.reshape(1, N)
    b_spec = pl.BlockSpec((1, tn), lambda i, j, k: (0, j))
    return pl.pallas_call(
        _matmul_bias_kernel,
        out_shape=jax.ShapeDtypeStruct((M, N), x.dtype),
        grid_spec=pltpu.PrefetchScalarGridSpec(
            num_scalar_prefetch=0, grid=grid,
            in_specs=[x_spec, w_spec, b_spec], out_specs=o_spec,
            scratch_shapes=scratch),
        compiler_params=cparams,
    )(x, w, b2)


# ----------------------------- Flash attention core -----------------------------

def _flash_mha_kernel(q_ref, k_ref, v_ref, o_ref, m_sc, l_sc, acc_sc, *, hsub, dh):
    """One (batch, head-group, q-tile) block; kv-tile is the innermost (reduction) grid axis.

    Refs are (tq, hsub*dh) / (tk, hsub*dh) slabs holding `hsub` heads side by side
    in the merged-head layout (head h at columns [h*dh, (h+1)*dh)).  The scale is
    already folded into W_q, so there is no per-step scale/cast work.
    """
    kv = pl.program_id(3)

    @pl.when(kv == 0)
    def _():
        m_sc[...] = jnp.full_like(m_sc, -jnp.inf)
        l_sc[...] = jnp.zeros_like(l_sc)
        acc_sc[...] = jnp.zeros_like(acc_sc)

    for h in range(hsub):
        sl = slice(h * dh, (h + 1) * dh)
        qh = q_ref[:, sl]                       # (tq, dh), native dtype (bf16/f32)
        kh = k_ref[:, sl]                       # (tk, dh)
        # Scores straight off the MXU in f32; operands stay in their input dtype.
        s = jax.lax.dot_general(qh, kh, (((1,), (1,)), ((), ())),
                                preferred_element_type=jnp.float32)   # (tq, tk)

        m_prev = m_sc[:, h:h + 1]                                    # (tq, 1)
        m_new = jnp.maximum(m_prev, s.max(axis=-1, keepdims=True))
        alpha = jnp.exp(m_prev - m_new)
        p = jnp.exp(s - m_new)                                       # f32

        l_sc[:, h:h + 1] = alpha * l_sc[:, h:h + 1] + p.sum(axis=-1, keepdims=True)
        pv = jnp.dot(p.astype(v_ref.dtype), v_ref[:, sl],
                     preferred_element_type=jnp.float32)             # (tq, dh)
        acc_sc[:, sl] = alpha * acc_sc[:, sl] + pv
        m_sc[:, h:h + 1] = m_new

    @pl.when(kv == pl.num_programs(3) - 1)
    def _():
        for h in range(hsub):
            sl = slice(h * dh, (h + 1) * dh)
            inv = pl.reciprocal(l_sc[:, h:h + 1], approx=True)       # EUP slot, ~free
            o_ref[:, sl] = (acc_sc[:, sl] * inv).astype(o_ref.dtype)


def pallas_fused_mha(q, k, v, num_heads):
    """q, k, v: (B, N, D) in merged-head layout (head h at columns h*Dh).
    Returns softmax(q k^T) v in the same merged-head (B, N, D) layout (scale
    pre-folded into q)."""
    B, N, D = q.shape
    Dh = D // num_heads
    hsub = _pick_head_group(num_heads, Dh)
    G = num_heads // hsub
    hd = hsub * Dh

    tq = _pick_tile(N, 128, 8)
    # Bigger kv tiles fill the 256-wide v6e/v7x MXU pass and amortize per-step
    # overhead; harmless on v5e (blocks are tiny either way).
    tk = _pick_tile(N, 512, 8)
    grid = (B, G, N // tq, N // tk)

    kernel = functools.partial(_flash_mha_kernel, hsub=hsub, dh=Dh)
    return pl.pallas_call(
        kernel,
        out_shape=jax.ShapeDtypeStruct((B, N, D), q.dtype),
        grid_spec=pltpu.PrefetchScalarGridSpec(
            num_scalar_prefetch=0,
            grid=grid,
            in_specs=[
                pl.BlockSpec((None, tq, hd), lambda b, g, qi, ki: (b, qi, g)),
                pl.BlockSpec((None, tk, hd), lambda b, g, qi, ki: (b, ki, g)),
                pl.BlockSpec((None, tk, hd), lambda b, g, qi, ki: (b, ki, g)),
            ],
            out_specs=pl.BlockSpec((None, tq, hd), lambda b, g, qi, ki: (b, qi, g)),
            scratch_shapes=[
                pltpu.VMEM((tq, hsub), jnp.float32),   # running max, per head
                pltpu.VMEM((tq, hsub), jnp.float32),   # running denom, per head
                pltpu.VMEM((tq, hd), jnp.float32),     # running numerator
            ],
        ),
        compiler_params=pltpu.CompilerParams(
            dimension_semantics=("parallel", "parallel", "parallel", "arbitrary")),
    )(q, k, v)


# ----------------------------- Full module forward -----------------------------

def prepare_params(w_qkv, b_qkv, w_proj, b_proj, num_heads, compute_dtype=None):
    """One-time (offline) parameter prep:
      * split W_qkv into W_q / W_k / W_v (so no activation slicing/transposing),
      * fold head_dim^-0.5 into W_q (and b_q if present),
      * optionally cast weights to a compute dtype (bf16 = TPU analog of the
        module's autocast half-precision Linears).  Biases stay f32; they are
        added in the f32 GEMM epilogue anyway.
    Weights are stored as (in, out) so the kernels compute x @ W + b.
    """
    D = w_qkv.shape[0]
    Dh = D // num_heads
    scale = Dh ** -0.5

    w_q = w_qkv[:, :D] * scale
    w_k = w_qkv[:, D:2 * D]
    w_v = w_qkv[:, 2 * D:]
    if b_qkv is not None:
        b_q, b_k, b_v = b_qkv[:D] * scale, b_qkv[D:2 * D], b_qkv[2 * D:]
    else:
        b_q = b_k = b_v = None

    if compute_dtype is not None:
        w_q, w_k, w_v, w_proj = (a.astype(compute_dtype) for a in (w_q, w_k, w_v, w_proj))
        # TODO(synk): for v7x inference, fp8 weight quantization of the projections
        # (v7x MXU has no int path) is a further option not implemented here.

    return {"w_q": w_q, "w_k": w_k, "w_v": w_v,
            "b_q": b_q, "b_k": b_k, "b_v": b_v,
            "w_proj": w_proj, "b_proj": b_proj}


def vit_attention(x, params, num_heads):
    """x: (B, N, D) -> (B, N, D).  All activations stay in the merged-head
    (B, N, D) layout end-to-end; no HBM transposes."""
    B, N, D = x.shape
    cdtype = params["w_q"].dtype
    x2 = x.reshape(B * N, D).astype(cdtype)

    q = pallas_linear(x2, params["w_q"], params["b_q"]).reshape(B, N, D)
    k = pallas_linear(x2, params["w_k"], params["b_k"]).reshape(B, N, D)
    v = pallas_linear(x2, params["w_v"], params["b_v"]).reshape(B, N, D)

    # TODO(synk): attn_drop / proj_drop are identities at p=0.0 (module default);
    # stochastic dropout for p>0 is not implemented.
    o = pallas_fused_mha(q, k, v, num_heads)                 # (B, N, D), merged heads

    out = pallas_linear(o.reshape(B * N, D), params["w_proj"], params["b_proj"])
    return out.reshape(B, N, D)


if __name__ == "__main__":
    batch, seq, dim, num_heads = 2, 8, 32, 8
    head_dim = dim // num_heads

    key = jax.random.PRNGKey(0)
    kx, kq, kp, kb = jax.random.split(key, 4)
    x = jax.random.normal(kx, (batch, seq, dim), dtype=jnp.float32)
    w_qkv = jax.random.normal(kq, (dim, 3 * dim), dtype=jnp.float32) * 0.05
    w_proj = jax.random.normal(kp, (dim, dim), dtype=jnp.float32) * 0.05
    b_proj = jax.random.normal(kb, (dim,), dtype=jnp.float32) * 0.05

    # Pure-JAX reference mirroring the PyTorch forward (f32, qkv_bias=False).
    scale = head_dim ** -0.5
    hp = jax.lax.Precision.HIGHEST
    qkv_r = jnp.dot(x.reshape(batch * seq, dim), w_qkv, precision=hp)
    qkv_r = qkv_r.reshape(batch, seq, 3, num_heads, head_dim).transpose(2, 0, 3, 1, 4)
    q_r, k_r, v_r = qkv_r[0], qkv_r[1], qkv_r[2]
    attn = jnp.einsum("bhqd,bhkd->bhqk", q_r, k_r, precision=hp) * scale
    attn = jax.nn.softmax(attn, axis=-1)
    o_r = jnp.einsum("bhqk,bhkd->bhqd", attn, v_r, precision=hp)
    o_r = o_r.transpose(0, 2, 1, 3).reshape(batch * seq, dim)
    ref = (jnp.dot(o_r, w_proj, precision=hp) + b_proj).reshape(batch, seq, dim)

    # f32 path (module's attention section is explicitly f32).
    params_f32 = prepare_params(w_qkv, None, w_proj, b_proj, num_heads)
    out_f32 = vit_attention(x, params_f32, num_heads)
    out_f32 = jax.block_until_ready(out_f32)
    assert jnp.allclose(out_f32, ref, atol=2e-3, rtol=2e-3), "f32 mismatch vs reference"

    # bf16 path (TPU analog of the module's autocast half-precision Linears).
    params_bf16 = prepare_params(w_qkv, None, w_proj, b_proj, num_heads,
                                 compute_dtype=jnp.bfloat16)
    out_bf16 = vit_attention(x, params_bf16, num_heads).astype(jnp.float32)
    out_bf16 = jax.block_until_ready(out_bf16)
    assert jnp.allclose(out_bf16, ref, atol=5e-2, rtol=5e-2), "bf16 mismatch vs reference"

    print("KERNEL_OK")
</pallas_src>

<mosaic_0001>
module attributes {stable_mosaic.version = 11 : i64} {
  func.func @_matmul_kernel(%arg0: i32, %arg1: i32, %arg2: i32, %arg3: memref<16x32xf32, #tpu.memory_space<vmem>>, %arg4: memref<32x32xf32, #tpu.memory_space<vmem>>, %arg5: memref<16x32xf32, #tpu.memory_space<vmem>>, %arg6: memref<16x32xf32, #tpu.memory_space<vmem>>) attributes {dimension_semantics = [#tpu.dimension_semantics<parallel>, #tpu.dimension_semantics<parallel>, #tpu.dimension_semantics<arbitrary>], iteration_bounds = array<i64: 1, 1, 1>, scalar_prefetch = 0 : i64, scratch_operands = 1 : i64, tpu.core_type = #tpu.core_type<tc>, window_params = [{transform_indices = @transform_0, window_bounds = array<i64: 16, 32>}, {transform_indices = @transform_1, window_bounds = array<i64: 32, 32>}, {transform_indices = @transform_2, window_bounds = array<i64: 16, 32>}]} {
    %c0_i32 = arith.constant 0 : i32
    %0 = arith.cmpi eq, %arg2, %c0_i32 : i32
    %1 = arith.extui %0 : i1 to i32
    %c0_i32_0 = arith.constant 0 : i32
    %2 = arith.cmpi ne, %1, %c0_i32_0 : i32
    scf.if %2 {
      %cst_10 = arith.constant 0.000000e+00 : f32
      %12 = vector.broadcast %cst_10 : f32 to vector<16x32xf32>
      %c0_11 = arith.constant 0 : index
      %c0_12 = arith.constant 0 : index
      %13 = vector.load %arg6[%c0_11, %c0_12] : memref<16x32xf32, #tpu.memory_space<vmem>>, vector<16x32xf32>
      tpu.vector_store %arg6[%c0_11, %c0_12], %12 {strides = array<i32>} : memref<16x32xf32, #tpu.memory_space<vmem>>, vector<16x32xf32>,
    } else {
    }
    %c0 = arith.constant 0 : index
    %c0_1 = arith.constant 0 : index
    %3 = vector.load %arg6[%c0, %c0_1] : memref<16x32xf32, #tpu.memory_space<vmem>>, vector<16x32xf32>
    %c0_2 = arith.constant 0 : index
    %c0_3 = arith.constant 0 : index
    %4 = vector.load %arg3[%c0_2, %c0_3] : memref<16x32xf32, #tpu.memory_space<vmem>>, vector<16x32xf32>
    %c0_4 = arith.constant 0 : index
    %c0_5 = arith.constant 0 : index
    %5 = vector.load %arg4[%c0_4, %c0_5] : memref<32x32xf32, #tpu.memory_space<vmem>>, vector<32x32xf32>
    %cst = arith.constant dense<0.000000e+00> : vector<16x32xf32>
    %6 = tpu.matmul %4, %5, %cst {dimension_numbers = #tpu.dot_dimension_numbers<[1], [0], [0], [1], [0, 0, 1, 1], [], []>} : vector<16x32xf32>, vector<32x32xf32>, vector<16x32xf32> -> vector<16x32xf32>
    %7 = arith.addf %3, %6 : vector<16x32xf32>
    %c0_6 = arith.constant 0 : index
    %c0_7 = arith.constant 0 : index
    %8 = vector.load %arg6[%c0_6, %c0_7] : memref<16x32xf32, #tpu.memory_space<vmem>>, vector<16x32xf32>
    tpu.vector_store %arg6[%c0_6, %c0_7], %7 {strides = array<i32>} : memref<16x32xf32, #tpu.memory_space<vmem>>, vector<16x32xf32>,
    %c0_i32_8 = arith.constant 0 : i32
    %9 = arith.cmpi eq, %arg2, %c0_i32_8 : i32
    %10 = arith.extui %9 : i1 to i32
    %c0_i32_9 = arith.constant 0 : i32
    %11 = arith.cmpi ne, %10, %c0_i32_9 : i32
    scf.if %11 {
      %c0_10 = arith.constant 0 : index
      %c0_11 = arith.constant 0 : index
      %12 = vector.load %arg6[%c0_10, %c0_11] : memref<16x32xf32, #tpu.memory_space<vmem>>, vector<16x32xf32>
      %c0_12 = arith.constant 0 : index
      %c0_13 = arith.constant 0 : index
      %13 = vector.load %arg5[%c0_12, %c0_13] : memref<16x32xf32, #tpu.memory_space<vmem>>, vector<16x32xf32>
      tpu.vector_store %arg5[%c0_12, %c0_13], %12 {strides = array<i32>} : memref<16x32xf32, #tpu.memory_space<vmem>>, vector<16x32xf32>,
    } else {
    }
    return
  }
  func.func @transform_0(%arg0: i32, %arg1: i32, %arg2: i32) -> (i32, i32) {
    %c0_i32 = arith.constant 0 : i32
    return %arg0, %arg2 : i32, i32
  }
  func.func @transform_1(%arg0: i32, %arg1: i32, %arg2: i32) -> (i32, i32) {
    %c0_i32 = arith.constant 0 : i32
    return %arg2, %arg1 : i32, i32
  }
  func.func @transform_2(%arg0: i32, %arg1: i32, %arg2: i32) -> (i32, i32) {
    %c0_i32 = arith.constant 0 : i32
    return %arg0, %arg1 : i32, i32
  }
}

</mosaic_0001>

<bundles_post_ra>
// kernel: tpu_custom_call.1
= control target key start
LH: loop header
LB: loop body
LE: loop exit
PB: predicated region body
PF: predicated region fallthrough
CT: control target
= control target key end

     0   :  { %7 = vsyncpa [#allocation4], 0  ;;  %s304_s0 = inlined_call_operand.hbm [shape: f32[16,32], index: 0, kind: input, shape index: {}]   ;;  %s305_s1 = inlined_call_operand.hbm [shape: f32[32,32], index: 1, kind: input, shape index: {}]   ;;  %s306_s2 = inlined_call_operand.hbm [shape: f32[16,32], index: 2, kind: output, shape index: {}]  }
   0x1   :  { %8 = vsyncpa [#allocation7], 0 }
   0x2   :  { %9 = vsyncpa [#allocation5], 0  ;;  %s257_s9 = smov [#allocation3]  }
   0x3   :  { %s15_s10 = sshll.u32 %s257_s9, 4  ;;  %s16_s10 = int_to_ptr.vmem [resolvable:$true] %s15_s10 }
   0x4   :  { %s199_s11 = scalar_lea.vmem %s16_s10, 256  ;;  %p204_p1 = scmp.lt.s32.totalorder %s16_s10, %s16_s10 }
   0x5   :  { %p200_p0 = scmp.ne.s32.totalorder %s16_s10, %s199_s11  ;;  %p205_p2 = scmp.lt.s32.totalorder %s199_s11, %s199_s11 }
   0x7   :  { %p206_p3 = por %p205_p2, %p204_p1 }
   0x9   :  { %p207_p4 = pnand %p206_p3, %p200_p0 }
   0xb   :  { %210 = shalt.err (!%p207_p4)
}
   0xc   :  { %s258_s12 = smov 128   ;;  %s259_s13 = smov 8  }
   0xd   :  { %21 = dma.hbm_to_vmem [thread:$0]  %s304_s0, 256, %s16_s10, [#allocation4], %s258_s12, %s258_s12, %s259_s13  }
   0xe   :  { %s260_s16 = smov [#allocation6]  }
   0xf   :  { %s27_s17 = sshll.u32 %s260_s16, 4  ;;  %s28_s17 = int_to_ptr.vmem [resolvable:$true] %s27_s17 }
  0x10   :  { %s219_s18 = scalar_lea.vmem %s28_s17, 512  ;;  %p224_p6 = scmp.lt.s32.totalorder %s28_s17, %s28_s17 }
  0x11   :  { %p220_p5 = scmp.ne.s32.totalorder %s28_s17, %s219_s18  ;;  %p225_p7 = scmp.lt.s32.totalorder %s219_s18, %s219_s18 }
  0x13   :  { %p226_p8 = por %p225_p7, %p224_p6 }
  0x15   :  { %p227_p9 = pnand %p226_p8, %p220_p5 }
  0x17   :  { %230 = shalt.err (!%p227_p9)
}
  0x18   :  { %33 = dma.hbm_to_vmem [thread:$0]  %s305_s1, 512, %s28_s17, [#allocation7], %s258_s12, %s258_s12, %s259_s13  }
  0x19   :  { %251 = dma.done.wait [#allocation4], 256  }
  0x1a   :  { %252 = vsyncadd [#allocation4], 4294967040 }
  0x1b   :  { %253 = dma.done.wait [#allocation7], 512  }
  0x1c   :  { %254 = vsyncadd [#allocation7], 4294966784  ;;  %vm44_vm0 = vcmask 261120   ;;  %v261_v0 = vmov 0.0   ;;  %v54_v1 = vld [vmem:[#allocation6 + $0x18] sm:$0xff]  ;;  %v53_v2 = vld [vmem:[#allocation6 + $0x10] sm:$0xff] }
  0x1d   :  { %46 = vst.msk [vmem:[#allocation2 + $0x8] sm:$0xff] %vm44_vm0, %v261_v0  ;;  %45 = vst.msk [vmem:[#allocation2] sm:$0xff] %vm44_vm0, %v261_v0  ;;  %174 = vmatprep.subr.mxu0 %v54_v1  ;;  %v49_v3 = vld [vmem:[#allocation3] sm:$0xff]  ;;  %v52_v4 = vld [vmem:[#allocation6 + $0x8] sm:$0xff]  ;;  %s262_s0 = smov [#allocation8]  }
  0x1e   :  { %175 = vmatpush3.msra.mxu0 %v54_v1  ;;  %182 = vmatprep.mubr.msk.f32.mxu0 %vm44_vm0, %v49_v3  ;;  %v51_v5 = vld [vmem:[#allocation6] sm:$0xff]  ;;  %v50_v6 = vld [vmem:[#allocation3 + $0x8] sm:$0xff]  ;;  %s153_s1 = sshll.u32 %s262_s0, 4  ;;  %s154_s1 = int_to_ptr.vmem [resolvable:$true] %s153_s1 }
  0x1f   :  { %176 = vmatprep.subr.mxu0 %v53_v2  ;;  %s231_s21 = scalar_lea.vmem %s154_s1, 256  ;;  %p236_p11 = scmp.lt.s32.totalorder %s154_s1, %s154_s1 }
  0x20   :  { %177 = vmatpush3.msra.mxu0 %v53_v2  ;;  %p232_p10 = scmp.ne.s32.totalorder %s154_s1, %s231_s21  ;;  %p237_p12 = scmp.lt.s32.totalorder %s231_s21, %s231_s21 }
  0x21   :  { %178 = vmatprep.subr.mxu0 %v52_v4 }
  0x22   :  { %179 = vmatpush3.msra.mxu0 %v52_v4  ;;  %p238_p13 = por %p237_p12, %p236_p11 }
  0x23   :  { %180 = vmatprep.subr.mxu0 %v51_v5 }
  0x24   :  { %181 = vmatpush3.msra.mxu0 %v51_v5  ;;  %v48_v7 = vld [vmem:[#allocation2 + $0x8] sm:$0xff]  ;;  %v47_v9 = vld [vmem:[#allocation2] sm:$0xff]  ;;  %p239_p0 = pnand %p238_p13, %p232_p10 }
  0x25   :  { %183 = vmatmul.mubr.msk.f32.vlgmr.msra.gmra.mxu0 %vm44_vm0, %v50_v6 }
  0xe5   :  { %v184_v8 = vpop.f32.mrf.mxu0 }
  0xe6   :  { %v138_v10 = vadd.f32 %v184_v8, %v48_v7 }
  0xe7   :  { %v128_v11 = vpop.f32.mrf.mxu0 }
  0xe8   :  { %140 = vst.msk [vmem:[#allocation2 + $0x8] sm:$0xff] %vm44_vm0, %v138_v10  ;;  %v137_v12 = vadd.f32 %v128_v11, %v47_v9 }
  0xea   :  { %139 = vst.msk [vmem:[#allocation2] sm:$0xff] %vm44_vm0, %v137_v12 }
  0xef   :  { %v145_v13 = vld [vmem:[#allocation2 + $0x8] sm:$0xff] }
  0xf0   :  { %147 = vst.msk [vmem:[#allocation8 + $0x8] sm:$0xff] %vm44_vm0, %v145_v13 }
  0xf1   :  { %v144_v14 = vld [vmem:[#allocation2] sm:$0xff] }
  0xf2   :  { %146 = vst.msk [vmem:[#allocation8] sm:$0xff] %vm44_vm0, %v144_v14 }
  0xf3   :  { %242 = shalt.err (!%p239_p0)
}
  0xf4   :  { %159 = dma.vmem_to_hbm [thread:$0]  %s154_s1, 256, %s306_s2, [#allocation5], %s258_s12, %s258_s12, %s259_s13  }
  0xf5   :  { %255 = dma.done.wait [#allocation5], 256  }
  0xf6   :  { %256 = vsyncadd [#allocation5], 4294967040 }
  0xf7   :  { %163 = vsyncpa [#allocation4], 1 }
  0xf8   :  { %164 = vsyncpa [#allocation7], 1 }
  0xf9   :  { %165 = vsyncpa [#allocation5], 1 }

</bundles_post_ra>
